<compile_context>
chip_gen: v5e
topology: v5e:2x2
jax: 0.10.0
libtpu: 0.0.40
codegen_flags: <defaults>
</compile_context>

<pallas_src>
import math

import jax
import jax.numpy as jnp
from jax.experimental import pallas as pl
from jax.experimental.pallas import tpu as pltpu


def _glu_kernel(x_ref, o_ref):
    # x_ref: (2, rows, lanes) VMEM tile (leading batch dim squeezed); o_ref: (rows, lanes).
    a = x_ref[0]                                              # first half, input dtype
    b = x_ref[1]                                              # second half
    gate = jax.nn.sigmoid(b.astype(jnp.float32)).astype(o_ref.dtype)
    o_ref[...] = a * gate


def _sublane_unit(itemsize):
    # Native sublane packing: 8 rows for 32-bit, 16 for 16-bit, 32 for 8-bit dtypes.
    return 8 * max(1, 4 // itemsize)


def _plan_flat_tiles(flat, itemsize, lane_max=1024, half_block_bytes=1 << 20):
    """View `flat` elements as (R, L) with L a 128-multiple; pick row tile by byte budget."""
    L = 128
    # Grow L while it still divides, stays <= lane_max, and leaves >= 8 rows (vreg-dense).
    while (L * 2 <= lane_max) and (flat % (L * 2) == 0) and (flat // (L * 2) >= 8):
        L *= 2
    R = flat // L
    sub = _sublane_unit(itemsize)
    rb_max = max(1, half_block_bytes // (L * itemsize))
    if rb_max >= R:
        rb = R                                                # full extent: always legal
    else:
        rb = max(sub, (rb_max // sub) * sub)
        rb = min(rb, R)
    return R, L, rb


def _plan_2d_tiles(c, hw, itemsize, lane_max=2048, half_block_bytes=1 << 20):
    """Fallback tiling of the (c, hw) plane when c*hw is not a multiple of 128."""
    if hw >= 128:
        tb = 128
        while tb * 2 <= min(hw, lane_max):
            tb *= 2                                           # cdiv masks the tail
    else:
        tb = hw                                               # full extent (< 128 lanes)
    sub = _sublane_unit(itemsize)
    cb_max = max(1, half_block_bytes // (tb * itemsize))
    if cb_max >= c:
        cb = c
    else:
        cb = max(sub, (cb_max // sub) * sub)
        cb = min(cb, c)
    return cb, tb


def glu(x):
    """GLU over dim 1 of an (N, 2C, *spatial) array: x[:, :C] * sigmoid(x[:, C:])."""
    assert x.ndim >= 2
    n, c2 = x.shape[0], x.shape[1]
    assert c2 % 2 == 0, "channels dont divide 2!"
    c = c2 // 2
    spatial = x.shape[2:]
    hw = math.prod(spatial) if spatial else 1
    flat = c * hw
    itemsize = jnp.dtype(x.dtype).itemsize

    if flat % 128 == 0:
        # Flattened per-half plane, tiled as (rows, lanes) by byte budget.
        R, L, rb = _plan_flat_tiles(flat, itemsize)
        xr = x.reshape(n, 2, R, L)                            # free, contiguous reshape
        grid = (n, pl.cdiv(R, rb))
        in_specs = [pl.BlockSpec((None, 2, rb, L), lambda i, j: (i, 0, j, 0))]
        out_specs = pl.BlockSpec((None, rb, L), lambda i, j: (i, j, 0))
        out_shape = jax.ShapeDtypeStruct((n, R, L), x.dtype)
    else:
        # Awkward sizes: budgeted 2D tiling of (c, hw); masked tails instead of
        # whole-extent blocks (no VMEM blow-ups, keeps spatial parallelism).
        cb, tb = _plan_2d_tiles(c, hw, itemsize)
        xr = x.reshape(n, 2, c, hw)
        grid = (n, pl.cdiv(c, cb), pl.cdiv(hw, tb))
        in_specs = [pl.BlockSpec((None, 2, cb, tb), lambda i, j, k: (i, 0, j, k))]
        out_specs = pl.BlockSpec((None, cb, tb), lambda i, j, k: (i, j, k))
        out_shape = jax.ShapeDtypeStruct((n, c, hw), x.dtype)

    cost = pl.CostEstimate(
        flops=4 * n * flat,
        transcendentals=n * flat,
        bytes_accessed=3 * n * flat * itemsize,               # read 2 halves + write 1
    )

    out = pl.pallas_call(
        _glu_kernel,
        out_shape=out_shape,
        grid_spec=pltpu.PrefetchScalarGridSpec(
            num_scalar_prefetch=0,
            grid=grid,
            in_specs=in_specs,
            out_specs=out_specs,
        ),
        compiler_params=pltpu.CompilerParams(
            dimension_semantics=("parallel",) * len(grid),
            vmem_limit_bytes=32 * 1024 * 1024,
        ),
        cost_estimate=cost,
    )(xr)

    return out.reshape((n, c) + spatial)


def _glu_ref(x):
    c = x.shape[1] // 2
    xf = x.astype(jnp.float32)
    return xf[:, :c] * jax.nn.sigmoid(xf[:, c:])


if __name__ == "__main__":
    key = jax.random.PRNGKey(0)
    k1, k2, k3 = jax.random.split(key, 3)

    glu_jit = jax.jit(glu)

    # Small NCHW case matching the PyTorch usage (GLU after a conv feature map).
    x = jax.random.normal(k1, (2, 8, 16, 16), dtype=jnp.float32)
    out = jax.block_until_ready(glu_jit(x))
    assert out.shape == (2, 4, 16, 16), out.shape
    ref = _glu_ref(x)
    assert jnp.allclose(out, ref, rtol=1e-5, atol=1e-5), \
        float(jnp.max(jnp.abs(out - ref)))

    # Larger bf16 case exercising the flattened, byte-budgeted tile path.
    xb = jax.random.normal(k2, (4, 64, 32, 32), dtype=jnp.float32).astype(jnp.bfloat16)
    outb = jax.block_until_ready(glu_jit(xb))
    assert outb.shape == (4, 32, 32, 32), outb.shape
    refb = _glu_ref(xb)
    assert jnp.allclose(outb.astype(jnp.float32), refb, rtol=2e-2, atol=2e-2), \
        float(jnp.max(jnp.abs(outb.astype(jnp.float32) - refb)))

    # Awkward shape (c*hw not a multiple of 128) exercising the fallback tiling.
    xo = jax.random.normal(k3, (2, 6, 5, 5), dtype=jnp.float32)
    outo = jax.block_until_ready(glu_jit(xo))
    assert outo.shape == (2, 3, 5, 5), outo.shape
    refo = _glu_ref(xo)
    assert jnp.allclose(outo, refo, rtol=1e-5, atol=1e-5), \
        float(jnp.max(jnp.abs(outo - refo)))

    print("KERNEL_OK")
</pallas_src>

<mosaic_0001>
module attributes {stable_mosaic.version = 11 : i64} {
  func.func @_glu_kernel(%arg0: i32, %arg1: i32, %arg2: memref<1x2x8x128xf32, #tpu.memory_space<vmem>>, %arg3: memref<1x8x128xf32, #tpu.memory_space<vmem>>) attributes {dimension_semantics = [#tpu.dimension_semantics<parallel>, #tpu.dimension_semantics<parallel>], iteration_bounds = array<i64: 2, 1>, scalar_prefetch = 0 : i64, scratch_operands = 0 : i64, tpu.core_type = #tpu.core_type<tc>, window_params = [{transform_indices = @transform_0, window_bounds = array<i64: 1, 2, 8, 128>}, {transform_indices = @transform_1, window_bounds = array<i64: 1, 8, 128>}]} {
    %c0 = arith.constant 0 : index
    %c0_0 = arith.constant 0 : index
    %c0_1 = arith.constant 0 : index
    %c0_2 = arith.constant 0 : index
    %0 = vector.load %arg2[%c0, %c0_0, %c0_1, %c0_2] : memref<1x2x8x128xf32, #tpu.memory_space<vmem>>, vector<1x1x8x128xf32>
    %1 = vector.shape_cast %0 : vector<1x1x8x128xf32> to vector<8x128xf32>
    %c0_3 = arith.constant 0 : index
    %c1 = arith.constant 1 : index
    %c0_4 = arith.constant 0 : index
    %c0_5 = arith.constant 0 : index
    %2 = vector.load %arg2[%c0_3, %c1, %c0_4, %c0_5] : memref<1x2x8x128xf32, #tpu.memory_space<vmem>>, vector<1x1x8x128xf32>
    %3 = vector.shape_cast %2 : vector<1x1x8x128xf32> to vector<8x128xf32>
    %4 = arith.negf %3 : vector<8x128xf32>
    %5 = math.exp %4 : vector<8x128xf32>
    %cst = arith.constant 1.000000e+00 : f32
    %6 = vector.broadcast %cst : f32 to vector<8x128xf32>
    %7 = arith.addf %6, %5 : vector<8x128xf32>
    %8 = arith.divf %6, %7 : vector<8x128xf32>
    %9 = arith.mulf %1, %8 : vector<8x128xf32>
    %c0_6 = arith.constant 0 : index
    %c0_7 = arith.constant 0 : index
    %c0_8 = arith.constant 0 : index
    %10 = vector.load %arg3[%c0_6, %c0_7, %c0_8] : memref<1x8x128xf32, #tpu.memory_space<vmem>>, vector<1x8x128xf32>
    %11 = vector.shape_cast %10 : vector<1x8x128xf32> to vector<8x128xf32>
    %12 = vector.shape_cast %9 : vector<8x128xf32> to vector<1x8x128xf32>
    tpu.vector_store %arg3[%c0_6, %c0_7, %c0_8], %12 {strides = array<i32>} : memref<1x8x128xf32, #tpu.memory_space<vmem>>, vector<1x8x128xf32>,
    return
  }
  func.func @transform_0(%arg0: i32, %arg1: i32) -> (i32, i32, i32, i32) {
    %c0_i32 = arith.constant 0 : i32
    %c0_i32_0 = arith.constant 0 : i32
    %c0_i32_1 = arith.constant 0 : i32
    return %arg0, %c0_i32, %arg1, %c0_i32_0 : i32, i32, i32, i32
  }
  func.func @transform_1(%arg0: i32, %arg1: i32) -> (i32, i32, i32) {
    %c0_i32 = arith.constant 0 : i32
    %c0_i32_0 = arith.constant 0 : i32
    return %arg0, %arg1, %c0_i32 : i32, i32, i32
  }
}

</mosaic_0001>

<bundles_post_ra>
// kernel: glu.1
= control target key start
LH: loop header
LB: loop body
LE: loop exit
PB: predicated region body
PF: predicated region fallthrough
CT: control target
= control target key end

     0   :  { %s322_s6 = smov 0   ;;  %s324_s7 = smov 0   ;;  %s355_s0 = inlined_call_operand.vmem [shape: f32[2,2,8,128], index: 0, kind: input, shape index: {}]   ;;  %s356_s1 = inlined_call_operand.vmem [shape: f32[2,8,128], index: 1, kind: output, shape index: {}]  }
   0x1   :  { %s326_s8 = smov 0  }
   0x2 LB: > { %s23_s9 = sadd.s32 1, %s306_s7  ;;  %p251_p0 = scmp.ge.s32.totalorder %s310_s8, 1  ;;  %s310_s8 = sphi %s326_s8, %s11_s8   ;;  %s306_s7 = sphi %s324_s7, %s358_s7   ;;  %s302_s6 = sphi %s322_s6, %s357_s6  }
   0x3   : > { %p25_p1 = scmp.ge.s32.totalorder %s23_s9, 2  ;;  %p106_p2 = scmp.lt.s32.totalorder %s310_s8, 3 }
   0x5   : > { %s360_s9 = smov (%p25_p1, %s23_s9), 0  ;;  %p107_p3 = pnand %p251_p0, %p106_p2 }
   0x6   : > { %p131_p4 = scmp.lt.s32.totalorder (!%p107_p3), %s302_s6, 1 }
   0x7   : > { %110 = sbr.rel (%p107_p3) target bundleno = 47 (0x2f), region = 24 }
   0xc   : > { %s362_s6 = smov (!%p131_p4, %s302_s6), 1 }
   0xd   : > { %s259_s10 = sshll.u32 %s362_s6, 4  ;;  %s254_s14 = sshll.u32 %s362_s6, 3 }
   0xe   : > { %s138_s13 = scalar_lea.vmem %s355_s0, %s259_s10  ;;  %s145_s17 = scalar_lea.vmem %s356_s1, %s254_s14 }
   0xf   : > { %v255_v0 = vld [vmem:[%s138_s13 + $0x8] sm:$0xff]  ;;  %v146_v12 = vld [vmem:[%s138_s13] sm:$0xff] }
  0x10   : > { %v256_v1 = vmul.f32 -1.442695, %v255_v0 }
  0x12   : > { %284 = vpow2.f32 %v256_v1 }
  0x18   : > { %v285_v2 = vpop.eup %284 }
  0x19   : > { %v152_v3 = vadd.f32 1.0, %v285_v2 }
  0x1b   : > { %286 = vrcp.f32 %v152_v3  ;;  %v164_v6 = vand.u32 2147483648, %v152_v3  ;;  %vm158_vm0 = vweird.f32 %v152_v3  ;;  %v162_v8 = vand.u32 2147483647, %v152_v3 }
  0x1d   : > { %v165_v10 = vor.u32 1.1754944e-38, %v164_v6  ;;  %vm163_vm3 = vcmp.eq.f32.partialorder %v162_v8, 8.507059e+37 }
  0x21   : > { %v287_v4 = vpop.eup %286 }
  0x22   : > { %v154_v5 = vmul.f32 %v287_v4, %v152_v3  ;;  %vm159_vm1 = vweird.f32 %v287_v4 }
  0x23   : > { %vm160_vm2 = vmor %vm158_vm0, %vm159_vm1 }
  0x24   : > { %v155_v7 = vsub.f32 1.0, %v154_v5 }
  0x26   : > { %v156_v9 = vmul.f32 %v287_v4, %v155_v7 }
  0x28   : > { %v157_v11 = vadd.f32 %v287_v4, %v156_v9 }
  0x2a   : > { %v161_v13 = vsel %vm160_vm2, %v287_v4, %v157_v11 }
  0x2b   : > { %v166_v14 = vsel %vm163_vm3, %v165_v10, %v161_v13 }
  0x2c   : > { %v168_v15 = vmul.f32 %v166_v14, %v146_v12 }
  0x2e   : > { %169 = vst [vmem:[%s145_s17] sm:$0xff] %v168_v15 }
  0x2f PF: > { %s11_s8 = sadd.s32 1, %s310_s8   ;;  %s357_s6 = smov %s306_s7 }
  0x30   : > { %p8_p5 = scmp.ge.s32.totalorder %s11_s8, 4   ;;  %s358_s7 = smov %s360_s9 }
  0x32   :  { %10 = sbr.rel (!%p8_p5) target bundleno = 2 (0x2), region = 55 }

</bundles_post_ra>
